<compile_context>
chip_gen: v6e
topology: v6e:2x2x1
jax: 0.10.0
libtpu: 0.0.40
codegen_flags: <defaults>
</compile_context>

<pallas_src>
import jax
import jax.numpy as jnp
from jax.experimental import pallas as pl
from jax.experimental.pallas import tpu as pltpu


def diag_gmm_kernel(w1_ref, w2_ref, bias_ref, x_ref, o_ref):
    # x_ref: (F, t_tile) slab for the current (batch, T-tile) grid point.
    x = x_ref[...]                                            # (F, t_tile)
    hp = jax.lax.Precision.HIGHEST
    # y = W1 @ (x*x) + W2 @ x + bias   (mv_norm folded into W1/W2/bias).
    y = jnp.dot(w1_ref[...], x * x,
                preferred_element_type=jnp.float32, precision=hp)
    y = y + jnp.dot(w2_ref[...], x,
                    preferred_element_type=jnp.float32, precision=hp)
    y = y + bias_ref[...]                                     # (C,1) bcast over T
    o_ref[...] = y.astype(o_ref.dtype)


def _round_up(n, m):
    return ((n + m - 1) // m) * m


def _choose_t_tile(B, T, C, F, t_tile_max, in_bytes, out_bytes,
                   vmem_tile_budget=24 * 1024 * 1024):
    """Lane-dense T tile: multiple of 128, VMEM-budgeted, >=2 grid steps."""
    t_full = _round_up(T, 128)
    t_tile = min(t_tile_max, t_full)
    # Double-buffered input + output tiles must fit the budget (v7x: 64 MiB VMEM).
    per_col = 2 * (F * in_bytes + C * out_bytes)
    t_budget = max(128, (vmem_tile_budget // per_col) // 128 * 128)
    t_tile = min(t_tile, t_budget)
    # v7x has 2 TensorCores: keep >= 2 steps on a parallel grid axis.
    if B == 1 and t_tile >= t_full and t_full > 128:
        t_tile = _round_up(-(-t_full // 2), 128)
    return _round_up(t_tile, 128)


def diag_gmm_forward(x, inv_sigma, two_mu_inv_sigma, llk_mean, llk_inv_std,
                     *, t_tile_max=8192, out_dtype=None):
    """x: (B, F, T); inv_sigma/two_mu_inv_sigma: (C, F); llk_*: (C, 1).

    Returns (B, C, T) in `out_dtype` (defaults to x.dtype). Pass
    out_dtype=jnp.bfloat16 to cut output HBM traffic if the caller tolerates it.
    """
    B, F, T = x.shape
    C = inv_sigma.shape[0]
    out_dtype = x.dtype if out_dtype is None else jnp.dtype(out_dtype)

    # ---- Trace-time fusion of weights & mv_norm (tiny arrays) ----
    w1 = (inv_sigma * llk_inv_std).astype(jnp.float32)           # (C, F)
    w2 = (-two_mu_inv_sigma * llk_inv_std).astype(jnp.float32)   # (C, F)
    bias = (-llk_mean * llk_inv_std).astype(jnp.float32)         # (C, 1)

    t_tile = _choose_t_tile(B, T, C, F, t_tile_max,
                            x.dtype.itemsize, out_dtype.itemsize)
    grid = (B, pl.cdiv(T, t_tile))   # ragged last tile -> masked writeback

    # Actual VMEM need (double-buffered tiles + resident weights), with headroom,
    # clamped well below v7x's 64 MiB physical VMEM.
    vmem_need = (2 * t_tile * (F * x.dtype.itemsize + C * out_dtype.itemsize)
                 + (2 * C * F + C) * 4)
    vmem_limit = int(min(32 * 1024 * 1024, max(4 * 1024 * 1024, 2 * vmem_need)))

    grid_spec = pltpu.PrefetchScalarGridSpec(
        num_scalar_prefetch=0,
        grid=grid,
        in_specs=[
            # Small weights/bias: constant index maps -> VMEM-resident.
            pl.BlockSpec((C, F), lambda b, t: (0, 0)),
            pl.BlockSpec((C, F), lambda b, t: (0, 0)),
            pl.BlockSpec((C, 1), lambda b, t: (0, 0)),
            # x: one (F, t_tile) slab per grid point (batch dim squeezed).
            pl.BlockSpec((None, F, t_tile), lambda b, t: (b, 0, t)),
        ],
        out_specs=pl.BlockSpec((None, C, t_tile), lambda b, t: (b, 0, t)),
    )

    return pl.pallas_call(
        diag_gmm_kernel,
        out_shape=jax.ShapeDtypeStruct((B, C, T), out_dtype),
        grid_spec=grid_spec,
        compiler_params=pltpu.CompilerParams(
            dimension_semantics=("parallel", "parallel"),
            vmem_limit_bytes=vmem_limit,
        ),
    )(w1, w2, bias, x)


if __name__ == "__main__":
    # Small, module-consistent shapes.
    B = 2      # batch
    F = 32     # feature_size  (gmm.mu.shape[1])
    C = 16     # n_components  (len(gmm.w))
    T = 200    # frames (deliberately NOT a multiple of 128 -> ragged last tile)

    key = jax.random.PRNGKey(0)
    k_mu, k_sigma, k_lm, k_ls, k_x = jax.random.split(key, 5)

    # Deterministic synthetic GMM parameters (would normally come from a fitted GMM).
    mu = jax.random.normal(k_mu, (C, F), dtype=jnp.float32)
    sigma = jax.random.uniform(k_sigma, (C, F), dtype=jnp.float32,
                               minval=0.5, maxval=1.5)
    llk_mean = jax.random.normal(k_lm, (C, 1), dtype=jnp.float32)
    llk_std = jax.random.uniform(k_ls, (C, 1), dtype=jnp.float32,
                                 minval=0.5, maxval=1.5)

    # Derived parameters, exactly as DiagGMMLayer.__init__ does.
    inv_sigma = 1.0 / sigma
    two_mu_inv_sigma = 2.0 * mu / sigma
    llk_inv_std = 1.0 / llk_std

    x = jax.random.normal(k_x, (B, F, T), dtype=jnp.float32)

    y = diag_gmm_forward(x, inv_sigma, two_mu_inv_sigma, llk_mean, llk_inv_std)
    y = jax.block_until_ready(y)

    # Pure-JAX reference of the original (unfused) formulation, at f32 precision.
    hp = jax.lax.Precision.HIGHEST
    x1_ref = jnp.einsum("cf,bft->bct", inv_sigma, x * x, precision=hp)
    x2_ref = jnp.einsum("cf,bft->bct", two_mu_inv_sigma, x, precision=hp)
    y_ref = (x1_ref - x2_ref - llk_mean[None]) * llk_inv_std[None]

    assert y.shape == (B, C, T)
    assert jnp.allclose(y, y_ref, atol=1e-4, rtol=1e-4)

    print("KERNEL_OK")
</pallas_src>

<mosaic_0001>
module attributes {stable_mosaic.version = 11 : i64} {
  func.func @diag_gmm_kernel(%arg0: i32, %arg1: i32, %arg2: memref<16x32xf32, #tpu.memory_space<vmem>>, %arg3: memref<16x32xf32, #tpu.memory_space<vmem>>, %arg4: memref<16x1xf32, #tpu.memory_space<vmem>>, %arg5: memref<1x32x256xf32, #tpu.memory_space<vmem>>, %arg6: memref<1x16x256xf32, #tpu.memory_space<vmem>>) attributes {dimension_semantics = [#tpu.dimension_semantics<parallel>, #tpu.dimension_semantics<parallel>], iteration_bounds = array<i64: 2, 1>, scalar_prefetch = 0 : i64, scratch_operands = 0 : i64, tpu.core_type = #tpu.core_type<tc>, window_params = [{pipeline_mode = #tpu.pipeline_mode<synchronous>, transform_indices = @transform_0, window_bounds = array<i64: 16, 32>}, {pipeline_mode = #tpu.pipeline_mode<synchronous>, transform_indices = @transform_1, window_bounds = array<i64: 16, 32>}, {pipeline_mode = #tpu.pipeline_mode<synchronous>, transform_indices = @transform_2, window_bounds = array<i64: 16, 1>}, {transform_indices = @transform_3, window_bounds = array<i64: 1, 32, 256>}, {transform_indices = @transform_4, window_bounds = array<i64: 1, 16, 256>}]} {
    %c0 = arith.constant 0 : index
    %c0_0 = arith.constant 0 : index
    %c0_1 = arith.constant 0 : index
    %0 = vector.load %arg5[%c0, %c0_0, %c0_1] : memref<1x32x256xf32, #tpu.memory_space<vmem>>, vector<1x32x256xf32>
    %1 = vector.shape_cast %0 : vector<1x32x256xf32> to vector<32x256xf32>
    %c0_2 = arith.constant 0 : index
    %c0_3 = arith.constant 0 : index
    %2 = vector.load %arg2[%c0_2, %c0_3] : memref<16x32xf32, #tpu.memory_space<vmem>>, vector<16x32xf32>
    %3 = arith.mulf %1, %1 : vector<32x256xf32>
    %cst = arith.constant dense<0.000000e+00> : vector<16x256xf32>
    %4 = tpu.matmul %2, %3, %cst {dimension_numbers = #tpu.dot_dimension_numbers<[1], [0], [0], [1], [0, 0, 1, 1], [], []>, precision = #tpu.contract_precision<fp32>} : vector<16x32xf32>, vector<32x256xf32>, vector<16x256xf32> -> vector<16x256xf32>
    %c0_4 = arith.constant 0 : index
    %c0_5 = arith.constant 0 : index
    %5 = vector.load %arg3[%c0_4, %c0_5] : memref<16x32xf32, #tpu.memory_space<vmem>>, vector<16x32xf32>
    %cst_6 = arith.constant dense<0.000000e+00> : vector<16x256xf32>
    %6 = tpu.matmul %5, %1, %cst_6 {dimension_numbers = #tpu.dot_dimension_numbers<[1], [0], [0], [1], [0, 0, 1, 1], [], []>, precision = #tpu.contract_precision<fp32>} : vector<16x32xf32>, vector<32x256xf32>, vector<16x256xf32> -> vector<16x256xf32>
    %7 = arith.addf %4, %6 : vector<16x256xf32>
    %c0_7 = arith.constant 0 : index
    %c0_8 = arith.constant 0 : index
    %8 = vector.load %arg4[%c0_7, %c0_8] : memref<16x1xf32, #tpu.memory_space<vmem>>, vector<16x1xf32>
    %9 = vector.broadcast %8 : vector<16x1xf32> to vector<16x256xf32>
    %10 = arith.addf %7, %9 : vector<16x256xf32>
    %c0_9 = arith.constant 0 : index
    %c0_10 = arith.constant 0 : index
    %c0_11 = arith.constant 0 : index
    %11 = vector.load %arg6[%c0_9, %c0_10, %c0_11] : memref<1x16x256xf32, #tpu.memory_space<vmem>>, vector<1x16x256xf32>
    %12 = vector.shape_cast %11 : vector<1x16x256xf32> to vector<16x256xf32>
    %13 = vector.shape_cast %10 : vector<16x256xf32> to vector<1x16x256xf32>
    tpu.vector_store %arg6[%c0_9, %c0_10, %c0_11], %13 {strides = array<i32>} : memref<1x16x256xf32, #tpu.memory_space<vmem>>, vector<1x16x256xf32>,
    return
  }
  func.func @transform_0(%arg0: i32, %arg1: i32) -> (i32, i32) {
    %c0_i32 = arith.constant 0 : i32
    %c0_i32_0 = arith.constant 0 : i32
    %c0_i32_1 = arith.constant 0 : i32
    return %c0_i32, %c0_i32_0 : i32, i32
  }
  func.func @transform_1(%arg0: i32, %arg1: i32) -> (i32, i32) {
    %c0_i32 = arith.constant 0 : i32
    %c0_i32_0 = arith.constant 0 : i32
    %c0_i32_1 = arith.constant 0 : i32
    return %c0_i32, %c0_i32_0 : i32, i32
  }
  func.func @transform_2(%arg0: i32, %arg1: i32) -> (i32, i32) {
    %c0_i32 = arith.constant 0 : i32
    %c0_i32_0 = arith.constant 0 : i32
    %c0_i32_1 = arith.constant 0 : i32
    return %c0_i32, %c0_i32_0 : i32, i32
  }
  func.func @transform_3(%arg0: i32, %arg1: i32) -> (i32, i32, i32) {
    %c0_i32 = arith.constant 0 : i32
    %c0_i32_0 = arith.constant 0 : i32
    return %arg0, %c0_i32, %arg1 : i32, i32, i32
  }
  func.func @transform_4(%arg0: i32, %arg1: i32) -> (i32, i32, i32) {
    %c0_i32 = arith.constant 0 : i32
    %c0_i32_0 = arith.constant 0 : i32
    return %arg0, %c0_i32, %arg1 : i32, i32, i32
  }
}

</mosaic_0001>

<bundles_post_ra>
// kernel: tpu_custom_call.1
= control target key start
LH: loop header
LB: loop body
LE: loop exit
PB: predicated region body
PF: predicated region fallthrough
CT: control target
= control target key end

     0   :  { %s2450_s0 = inlined_call_operand.vmem [shape: f32[16,32], index: 0, kind: input, shape index: {}]   ;;  %s2451_s1 = inlined_call_operand.hbm [shape: f32[16,32], index: 1, kind: input, shape index: {}]   ;;  %s2452_s2 = inlined_call_operand.vmem [shape: f32[16,1], index: 2, kind: input, shape index: {}]   ;;  %s2453_s3 = inlined_call_operand.hbm [shape: f32[2,32,200], index: 3, kind: input, shape index: {}]   ;;  %s2454_s4 = inlined_call_operand.hbm [shape: f32[2,16,200], index: 4, kind: output, shape index: {}]  }
   0x1   :  { %2456 = sst [smem:[#allocation11_spill]] %s2451_s1 }
   0x2   :  { %9 = vsyncpa [#allocation3], 0 }
   0x3   :  { %10 = vsyncpa [#allocation6], 0 }
   0x4   :  { %12 = vsyncpa [#allocation6 + $0x1], 0 }
   0x5   :  { %13 = vsyncpa [#allocation4], 0 }
   0x6   :  { %15 = vsyncpa [#allocation4 + $0x1], 0  ;;  %s1880_s15 = smov 0   ;;  %s1882_s16 = smov 0  }
   0x7   :  { %s1884_s17 = smov 0   ;;  %s1886_s18 = smov 0  }
   0x8   :  { %s1888_s19 = smov 0   ;;  %s1890_s20 = smov 0  }
   0x9 LB: > { %s1603_s21 = sadd.s32 4294967295, %s1842_s20   ;;  %s1604_s22 = sadd.s32 4294967294, %s1842_s20   ;;  %s1842_s20 = sphi %s1890_s20, %s21_s20   ;;  %s1838_s19 = sphi %s1888_s19, %s2474_s19   ;;  %s1834_s18 = sphi %s1886_s18, %s2473_s18   ;;  %s1830_s17 = sphi %s1884_s17, %s2472_s17   ;;  %s1826_s16 = sphi %s1882_s16, %s2471_s16   ;;  %s1822_s15 = sphi %s1880_s15, %s2470_s15  }
   0xa   : > { %p118_p0 = scmp.ne.s32.totalorder %s1826_s16, %s1822_s15  ;;  %p1914_p1 = scmp.eq.s32.totalorder %s1603_s21, 0 }
   0xb   : > { %p1918_p2 = scmp.eq.s32.totalorder %s1603_s21, 1  ;;  %p150_p3 = scmp.eq.s32.totalorder %s1604_s22, 1 }
   0xc   : > { %p1924_p4 = por %p1914_p1, %p118_p0  ;;  %p1605_p5 = scmp.ge.s32.totalorder %s1842_s20, 1 }
   0xd   : > { %p1929_p6 = por %p150_p3, %p118_p0  ;;  %p157_p7 = scmp.lt.s32.totalorder %s1842_s20, 3 }
   0xe   : > { %s2459_s25 = scalar_select %p1924_p4, 1, 0 }
   0xf   : > { %s2460_s26 = scalar_select %p1929_p6, 1, 0 }
  0x10   : > { %p1934_p8 = pnand %p1605_p5, %p157_p7  ;;  %s1844_s28 = smov [#allocation2]  }
  0x11   : > { %s172_s29 = sshll.u32 %s1844_s28, 4  ;;  %s33_s5 = sadd.s32 1, %s1838_s19  ;;  %s173_s29 = int_to_ptr.vmem [resolvable:$true] %s172_s29 }
  0x12   : > { %p1630_p9 = pneg %p1934_p8  ;;  %s1715_s6 = scalar_lea.vmem %s173_s29, 256 }
  0x13   : > { %p1716_p13 = scmp.ne.s32.totalorder %s173_s29, %s1715_s6  ;;  %p1723_p5 = scmp.lt.s32.totalorder %s173_s29, %s173_s29 }
  0x14   : > { %p1943_p11 = pnand %p1630_p9, %p1914_p1  ;;  %p1724_p7 = scmp.lt.s32.totalorder %s1715_s6, %s1715_s6 }
  0x16   : > { %p1706_p12 = pneg %p1943_p11  ;;  %p1725_p6 = por %p1724_p7, %p1723_p5 }
  0x18   : > { %p1718_p0 = pnand %p1716_p13, %p1706_p12 }
  0x1a   : > { %p1719_p3 = pneg %p1718_p0 }
  0x1c   : > { %p1726_p4 = pnand %p1725_p6, %p1719_p3 }
  0x1e   : > { %1729 = shalt.err (!%p1726_p4)
}
  0x1f   : > { %s1845_s7 = smov 128   ;;  %s1846_s8 = smov 8  }
  0x20   : > { %s2463_s1 = sld [smem:[#allocation11_spill]]  ;;  %p35_p6 = scmp.ge.s32.totalorder %s33_s5, 2 }
  0x21   : > { %s105_s11 = sadd.s32 1, %s1830_s17  ;;  %p112_p4 = scmp.ne.s32.totalorder %s1830_s17, %s1826_s16 }
  0x22   : > { %p113_p9 = scmp.eq.s32.totalorder %s1842_s20, 0  ;;  %s2476_s5 = smov (%p35_p6, %s33_s5), 0 }
  0x23   : > { %p1967_p13 = por %p1918_p2, %p112_p4  ;;  %s100_s14 = ssub.s32 %s1838_s19, %s2476_s5 }
  0x24   : > { %p1961_p12 = por %p113_p9, %p112_p4  ;;  %p1643_p0 = scmp.lt.s32.totalorder %s1842_s20, 2 }
  0x25   : > { %s189_s21 = sand.u32 1, %s1830_s17  }
  0x26   : > { %1633 = dma.hbm_to_vmem [thread:$0]  (!%p1943_p11), %s2463_s1, 256, %s173_s29, [#allocation3], %s1845_s7, %s1845_s7, %s1846_s8  }
  0x27   : > { %p103_p11 = scmp.eq.s32.totalorder %s100_s14, 0  ;;  %s1608_s22 = sshll.u32 %s189_s21, 6 }
  0x28   : > { %s1620_s29 = sshll.u32 %s1838_s19, 10  ;;  %s193_s8 = scalar_lea.vmem [#allocation5], %s1608_s22 }
  0x29   : > { %s1976_s28 = scalar_select %p103_p11, %s1830_s17, %s105_s11  }
  0x2a   : > { %s201_s7 = scalar_lea.hbm %s2453_s3, %s1620_s29  ;;  %s202_s9 = sshll.u32 %s193_s8, 4  ;;  %s203_s9 = int_to_ptr.vmem [resolvable:$true] %s202_s9 }
  0x2b   : > { %p1984_p2 = pnand %p1643_p0, %p1961_p12  ;;  %s190_s10 = scalar_lea.sflag [#allocation6], %s189_s21 }
  0x2c   : > { %s1743_s14 = scalar_lea.vmem %s203_s9, 1024  ;;  %s1847_s11 = smov [#allocation5]  }
  0x2d   : > { %p1732_p3 = pneg %p1984_p2  ;;  %p1744_p5 = scmp.ne.s32.totalorder %s203_s9, %s1743_s14 }
  0x2e   : > { %s1748_s1 = sshll.u32 %s1847_s11, 4  ;;  %s1749_s1 = int_to_ptr.vmem [resolvable:$false] %s1748_s1 }
  0x2f   : > { %p1746_p7 = pnand %p1744_p5, %p1732_p3  ;;  %s1750_s29 = scalar_lea.vmem %s1749_s1, 2048 }
  0x30   : > { %p1751_p4 = scmp.lt.s32.totalorder %s203_s9, %s1749_s1  ;;  %p1752_p9 = scmp.lt.s32.totalorder %s1750_s29, %s1743_s14 }
  0x31   : > { %p1747_p6 = pneg %p1746_p7 }
  0x32   : > { %p1753_p11 = por %p1752_p9, %p1751_p4 }
  0x34   : > { %p1754_p10 = pnand %p1753_p11, %p1747_p6 }
  0x36   : > { %1757 = shalt.err (!%p1754_p10)
}
  0x37   : > { %s1848_s12 = smov 256   ;;  %s1849_s22 = smov 16  }
  0x38   : > { %1637 = dma.hbm_to_vmem [thread:$0]  (!%p1984_p2), %s201_s7, 1024, %s203_s9, %s190_s10, %s1848_s12, %s1848_s12, %s1849_s22  }
  0x39   : > { %214 = sbr.rel (%p1934_p8) target bundleno = 363 (0x16b), region = 36 }
  0x3e   : > { %1809 = dma.done.wait (%p1914_p1), [#allocation3], 256  }
  0x3f   : > { %1811 = vsyncadd (%p1914_p1), [#allocation3], 4294967040  ;;  %s1999_s1 = sand.u32 1, %s1826_s16   ;;  %p2467_p10 = scmp.ne.s32.totalorder %s2459_s25, 0 }
  0x40   : > { %s1613_s21 = sshll.u32 %s1999_s1, 6  ;;  %s221_s30 = scalar_lea.sflag [#allocation6], %s1999_s1 }
  0x41   : > { %s224_s6 = scalar_lea.vmem [#allocation5], %s1613_s21 }
  0x42   : > { %1813 = dma.done.wait (%p2467_p10), %s221_s30, 1024  }
  0x43   : > { %1815 = vsyncadd (%p2467_p10), %s221_s30, 4294966272  ;;  %v1850_v0 = vmov 0.0   ;;  %v1851_v1 = vmov 0   ;;  %v2009_v2 = vld [vmem:[%s224_s6 + $0x38] sm:$0xff]  ;;  %v2011_v3 = vld [vmem:[%s224_s6 + $0x30] sm:$0xff]  ;;  %vm271_vm0 = vcmask 261120  }
  0x44   : > { %350 = vmatprep.mubr.f32.mxu0 %v1850_v0  ;;  %477 = vmatprep.mubr.f32.mxu1 %v1850_v0  ;;  %v2013_v4 = vld [vmem:[%s224_s6 + $0x28] sm:$0xff]  ;;  %v2016_v5 = vand.u32 4294901760, %v2009_v2  ;;  %v2019_v6 = vand.u32 4294901760, %v2011_v3  ;;  %v2024_v8 = vld [vmem:[%s224_s6 + $0x20] sm:$0xff]  ;;  %v2026_v9 = vld [vmem:[%s224_s6 + $0x18] sm:$0xff]  ;;  %s1614_s14 = sshll.u32 %s1999_s1, 5 }
  0x45   : > { %1703 = vset.pattern.permute.xlu0 %v1851_v1  ;;  %v2022_v7 = vand.u32 4294901760, %v2013_v4  ;;  %v2028_v10 = vld [vmem:[%s224_s6 + $0x10] sm:$0xff]  ;;  %v2031_v11 = vand.u32 4294901760, %v2024_v8  ;;  %v2034_v12 = vand.u32 4294901760, %v2026_v9  ;;  %v2039_v14 = vld [vmem:[%s224_s6 + $0x8] sm:$0xff]  ;;  %v2041_v15 = vld [vmem:[%s224_s6] sm:$0xff] }
  0x46   : > { %v2037_v13 = vand.u32 4294901760, %v2028_v10  ;;  %v269_v16 = vld [vmem:[#allocation2] sm:$0xff]  ;;  %303 = vmatprep.subr.mxu0 %v2016_v5  ;;  %v2045_v17 = vand.u32 4294901760, %v2039_v14  ;;  %v2049_v18 = vsub.f32 %v2009_v2, %v2016_v5  ;;  %v2052_v19 = vand.u32 4294901760, %v2041_v15  ;;  %v270_v21 = vld [vmem:[#allocation2 + $0x8] sm:$0xff]  ;;  %s248_s11 = scalar_lea.vmem [#allocation7], %s1614_s14 }
  0x47   : > { %v2056_v20 = vsub.f32 %v2011_v3, %v2019_v6  ;;  %305 = vmatpush1.msra.mxu0 %v2019_v6  ;;  %v273_v22 = vsel %vm271_vm0, %v269_v16, 0  ;;  %v2062_v23 = vsub.f32 %v2013_v4, %v2022_v7  ;;  %v2066_v24 = vsub.f32 %v2024_v8, %v2031_v11  ;;  %v1468_v26 = vld [vmem:[%s2452_s2] sm:$0xff]  ;;  %v1469_v35 = vld [vmem:[%s2452_s2 + $0x8] sm:$0xff]  ;;  %s1504_s29 = sshll.u32 %s248_s11, 4  ;;  %s1621_s12 = sshll.u32 %s1834_s18, 9  ;;  %s2397_s29 = int_to_ptr.vmem [resolvable:$true] %s1504_s29 }
  0x48   : > { %v2070_v25 = vsub.f32 %v2026_v9, %v2034_v12  ;;  %307 = vmatprep.subr.mxu0 %v2022_v7  ;;  %v399_v27 = vand.u32 4294901760, %v2049_v18  ;;  %v2078_v29 = vand.u32 4294901760, %v273_v22  ;;  %v2082_v30 = vsub.f32 %v2028_v10, %v2037_v13  ;;  %1472 = vperm.xlu0 %1703, %v1468_v26   ;;  %s2402_s30 = scalar_lea.hbm %s2454_s4, %s1621_s12  ;;  %s1489_s6 = scalar_lea.sflag [#allocation4], %s1999_s1 }
  0x49   : > { %v405_v28 = vand.u32 4294901760, %v2056_v20  ;;  %309 = vmatpush1.msra.mxu0 %v2031_v11  ;;  %v411_v31 = vand.u32 4294901760, %v2062_v23  ;;  %v417_v32 = vand.u32 4294901760, %v2066_v24  ;;  %v276_v34 = vsel %vm271_vm0, %v270_v21, 0  ;;  %s1758_s18 = scalar_lea.vmem %s2397_s29, 512  ;;  %s1852_s23 = smov [#allocation7]  }
  0x4a   : > { %v423_v33 = vand.u32 4294901760, %v2070_v25  ;;  %311 = vmatprep.subr.mxu0 %v2034_v12  ;;  %v400_v36 = vsub.f32 %v2049_v18, %v399_v27  ;;  %v2100_v38 = vsub.f32 %v273_v22, %v2078_v29  ;;  %v429_v39 = vand.u32 4294901760, %v2082_v30  ;;  %v259_v22 = vld [vmem:[%s2450_s0] sm:$0xff]  ;;  %p1759_p1 = scmp.ne.s32.totalorder %s2397_s29, %s1758_s18  ;;  %s1762_s25 = sshll.u32 %s1852_s23, 4  ;;  %s1763_s25 = int_to_ptr.vmem [resolvable:$false] %s1762_s25 }
  0x4b   : > { %v406_v37 = vsub.f32 %v2056_v20, %v405_v28  ;;  %313 = vmatpush1.msra.mxu0 %v2037_v13  ;;  %v412_v40 = vsub.f32 %v2062_v23, %v411_v31  ;;  %v418_v41 = vsub.f32 %v2066_v24, %v417_v32  ;;  %v2113_v43 = vand.u32 4294901760, %v276_v34  ;;  %s1764_s27 = scalar_lea.vmem %s1763_s25, 1024  ;;  %p1765_p0 = scmp.lt.s32.totalorder %s2397_s29, %s1763_s25 }
  0x4c   : > { %v424_v42 = vsub.f32 %v2070_v25, %v423_v33  ;;  %315 = vmatprep.subr.mxu0 %v2045_v17  ;;  %v401_v44 = vand.u32 4294901760, %v400_v36  ;;  %v353_v46 = vand.u32 4294901760, %v2100_v38  ;;  %v430_v47 = vsub.f32 %v2082_v30, %v429_v39  ;;  %1477 = vperm.xlu0 %1703, %v1469_v35   ;;  %p1760_p8 = pnand %p1759_p1, %p1967_p13  ;;  %p1766_p2 = scmp.lt.s32.totalorder %s1764_s27, %s1758_s18 }
  0x4d   : > { %v407_v45 = vand.u32 4294901760, %v406_v37  ;;  %317 = vmatpush1.msra.mxu0 %v2052_v19  ;;  %v413_v48 = vand.u32 4294901760, %v412_v40  ;;  %v419_v49 = vand.u32 4294901760, %v418_v41  ;;  %v2122_v50 = vsub.f32 %v276_v34, %v2113_v43 }
  0x4e   : > { %402 = vmatprep.subr.mxu1 %v401_v44  ;;  %v354_v51 = vsub.f32 %v2100_v38, %v353_v46  ;;  %518 = vmatprep.subr.mxu0 %v2049_v18  ;;  %v425_v52 = vand.u32 4294901760, %v424_v42  ;;  %v2130_v53 = vsub.f32 %v2039_v14, %v2045_v17  ;;  %v2134_v54 = vsub.f32 %v2041_v15, %v2052_v19  ;;  %p1761_p12 = pneg %p1760_p8  ;;  %p1767_p3 = por %p1766_p2, %p1765_p0 }
  0x4f   : > { %408 = vmatpush1.msra.mxu1 %v407_v45  ;;  %v364_v55 = vand.u32 4294901760, %v2122_v50  ;;  %v431_v57 = vand.u32 4294901760, %v430_v47  ;;  %v268_v21 = vmul.f32 %v2009_v2, %v2009_v2  ;;  %v267_v26 = vmul.f32 %v2011_v3, %v2011_v3 }
  0x50   : > { %v355_v56 = vand.u32 4294901760, %v354_v51  ;;  %414 = vmatprep.subr.mxu1 %v413_v48  ;;  %v435_v58 = vand.u32 4294901760, %v2130_v53  ;;  %v441_v59 = vand.u32 4294901760, %v2134_v54  ;;  %v266_v2 = vmul.f32 %v2013_v4, %v2013_v4  ;;  %p1768_p5 = pnand %p1767_p3, %p1761_p12 }
  0x51   : > { %420 = vmatpush1.msra.mxu1 %v419_v49  ;;  %v365_v60 = vsub.f32 %v2122_v50, %v364_v55  ;;  %v871_v34 = vsel %vm271_vm0, %v259_v22, 0  ;;  %v2176_v35 = vand.u32 4294901760, %v268_v21  ;;  %v265_v3 = vmul.f32 %v2024_v8, %v2024_v8 }
  0x52   : > { %356 = vmatmul.mubr.f32.vlgmr.msra.gmra.mxu0 %v355_v56  ;;  %426 = vmatprep.subr.mxu1 %v425_v52  ;;  %v436_v61 = vsub.f32 %v2130_v53, %v435_v58  ;;  %v442_v62 = vsub.f32 %v2134_v54, %v441_v59  ;;  %v2183_v18 = vand.u32 4294901760, %v267_v26  ;;  %v264_v4 = vmul.f32 %v2026_v9, %v2026_v9 }
  0x53   : > { %521 = vmatpush1.msra.mxu0 %v2056_v20  ;;  %361 = vmatprep.mubr.f32.mxu0 %v1850_v0  ;;  %v366_v63 = vand.u32 4294901760, %v365_v60  ;;  %v2194_v8 = vand.u32 4294901760, %v266_v2  ;;  %v263_v20 = vmul.f32 %v2028_v10, %v2028_v10  ;;  %v2204_v9 = vand.u32 4294901760, %v265_v3 }
  0x54   : > { %524 = vmatprep.subr.mxu0 %v2062_v23  ;;  %432 = vmatpush1.msra.mxu1 %v431_v57  ;;  %v437_v1 = vand.u32 4294901760, %v436_v61  ;;  %v443_v16 = vand.u32 4294901760, %v442_v62  ;;  %v262_v23 = vmul.f32 %v2039_v14, %v2039_v14  ;;  %v2215_v10 = vsub.f32 %v267_v26, %v2183_v18 }
  0x55   : > { %527 = vmatpush1.msra.mxu0 %v2066_v24  ;;  %v2219_v24 = vand.u32 4294901760, %v264_v4  ;;  %v261_v14 = vmul.f32 %v2041_v15, %v2041_v15  ;;  %v2240_v15 = vsub.f32 %v265_v3, %v2204_v9 }
  0x56   : > { %367 = vmatmul.mubr.f32.gmra.mxu0 %v366_v63  ;;  %438 = vmatprep.subr.mxu1 %v437_v1  ;;  %v2242_v37 = vand.u32 4294901760, %v262_v23 }
  0x57   : > { %530 = vmatprep.subr.mxu0 %v2070_v25  ;;  %444 = vmatpush1.msra.mxu1 %v443_v16  ;;  %v2231_v25 = vand.u32 4294901760, %v263_v20  ;;  %v2257_v41 = vsub.f32 %v264_v4, %v2219_v24  ;;  %v1015_v45 = vand.u32 4294901760, %v2240_v15 }
  0x58   : > { %533 = vmatpush1.msra.mxu0 %v2082_v30  ;;  %479 = vmatmul.mubr.f32.vlgmr.msra.gmra.mxu1 %v2078_v29 }
  0x59   : > { %536 = vmatprep.subr.mxu0 %v2130_v53  ;;  %614 = vmatprep.subr.mxu1 %v2016_v5  ;;  %v2262_v42 = vsub.f32 %v263_v20, %v2231_v25  ;;  %v1021_v49 = vand.u32 4294901760, %v2257_v41  ;;  %v1016_v52 = vsub.f32 %v2240_v15, %v1015_v45 }
  0x5a   : > { %539 = vmatpush1.msra.mxu0 %v2134_v54  ;;  %572 = vmatprep.mubr.f32.mxu0 %v1850_v0 }
  0x5b   : > { %616 = vmatpush1.msra.mxu1 %v2019_v6  ;;  %575 = vmatmul.mubr.f32.vlgmr.msra.gmra.mxu0 %v2100_v38 }
  0x5c   : > { %618 = vmatprep.subr.mxu1 %v2022_v7  ;;  %707 = vmatprep.subr.mxu0 %v399_v27  ;;  %v2190_v27 = vand.u32 4294901760, %v871_v34 }
  0x5d   : > { %484 = vmatprep.mubr.f32.mxu1 %v1850_v0  ;;  %620 = vmatpush1.msra.mxu1 %v2031_v11 }
  0x5e   : > { %711 = vmatpush1.msra.mxu0 %v405_v28  ;;  %486 = vmatmul.mubr.f32.gmra.mxu1 %v2113_v43  ;;  %v260_v28 = vld [vmem:[%s2450_s0 + $0x8] sm:$0xff] }
  0x5f   : > { %622 = vmatprep.subr.mxu1 %v2034_v12  ;;  %715 = vmatprep.subr.mxu0 %v411_v31  ;;  %v2209_v31 = vsub.f32 %v268_v21, %v2176_v35  ;;  %v874_v36 = vsel %vm271_vm0, %v260_v28, 0 }
  0x60   : > { %580 = vmatprep.mubr.f32.mxu0 %v1850_v0  ;;  %624 = vmatpush1.msra.mxu1 %v2037_v13  ;;  %v2248_v38 = vand.u32 4294901760, %v874_v36 }
  0x61   : > { %719 = vmatpush1.msra.mxu0 %v417_v32  ;;  %626 = vmatprep.subr.mxu1 %v2045_v17  ;;  %v2224_v32 = vsub.f32 %v871_v34, %v2190_v27  ;;  %v997_v30 = vand.u32 4294901760, %v2209_v31 }
  0x62   : > { %583 = vmatmul.mubr.f32.gmra.mxu0 %v2122_v50  ;;  %723 = vmatprep.subr.mxu0 %v423_v33  ;;  %v2234_v33 = vsub.f32 %v266_v2, %v2194_v8  ;;  %v1027_v50 = vand.u32 4294901760, %v2262_v42 }
  0x63   : > { %628 = vmatpush1.msra.mxu1 %v2052_v19  ;;  %661 = vmatprep.mubr.f32.mxu1 %v1850_v0  ;;  %v951_v40 = vand.u32 4294901760, %v2224_v32  ;;  %v998_v44 = vsub.f32 %v2209_v31, %v997_v30 }
  0x64   : > { %727 = vmatpush1.msra.mxu0 %v429_v39  ;;  %665 = vmatmul.mubr.f32.vlgmr.msra.gmra.mxu1 %v353_v46  ;;  %v2252_v39 = vand.u32 4294901760, %v261_v14  ;;  %v2272_v46 = vsub.f32 %v262_v23, %v2242_v37 }
  0x65   : > { %731 = vmatprep.subr.mxu0 %v435_v58  ;;  %808 = vmatprep.subr.mxu1 %v2016_v5  ;;  %v1003_v5 = vand.u32 4294901760, %v2215_v10  ;;  %v952_v48 = vsub.f32 %v2224_v32, %v951_v40  ;;  %v999_v51 = vand.u32 4294901760, %v998_v44  ;;  %v1028_v58 = vsub.f32 %v2262_v42, %v1027_v50 }
  0x66   : > { %735 = vmatpush1.msra.mxu0 %v441_v59  ;;  %768 = vmatprep.mubr.f32.mxu0 %v1850_v0  ;;  %v1033_v53 = vand.u32 4294901760, %v2272_v46 }
  0x67   : > { %810 = vmatpush1.msra.mxu1 %v2019_v6  ;;  %770 = vmatmul.mubr.f32.vlgmr.msra.gmra.mxu0 %v2078_v29  ;;  %v1009_v6 = vand.u32 4294901760, %v2234_v33  ;;  %v1004_v47 = vsub.f32 %v2215_v10, %v1003_v5  ;;  %v1029_v62 = vand.u32 4294901760, %v1028_v58 }
  0x68   : > { %812 = vmatprep.subr.mxu1 %v2022_v7  ;;  %901 = vmatprep.subr.mxu0 %v2176_v35  ;;  %v2278_v7 = vsub.f32 %v874_v36, %v2248_v38  ;;  %v1034_v59 = vsub.f32 %v2272_v46, %v1033_v53 }
  0x69   : > { %670 = vmatprep.mubr.f32.mxu1 %v1850_v0  ;;  %814 = vmatpush1.msra.mxu1 %v2031_v11  ;;  %v2283_v11 = vsub.f32 %v261_v14, %v2252_v39  ;;  %v1005_v54 = vand.u32 4294901760, %v1004_v47 }
  0x6a   : > { %903 = vmatpush1.msra.mxu0 %v2183_v18  ;;  %674 = vmatmul.mubr.f32.gmra.mxu1 %v364_v55  ;;  %v953_v55 = vand.u32 4294901760, %v952_v48  ;;  %v1035_v63 = vand.u32 4294901760, %v1034_v59 }
  0x6b   : > { %816 = vmatprep.subr.mxu1 %v2034_v12  ;;  %905 = vmatprep.subr.mxu0 %v2194_v8  ;;  %v1010_v12 = vsub.f32 %v2234_v33, %v1009_v6  ;;  %v1039_v56 = vand.u32 4294901760, %v2283_v11 }
  0x6c   : > { %775 = vmatprep.mubr.f32.mxu0 %v1850_v0  ;;  %818 = vmatpush1.msra.mxu1 %v2037_v13  ;;  %v962_v13 = vand.u32 4294901760, %v2278_v7 }
  0x6d   : > { %907 = vmatpush1.msra.mxu0 %v2204_v9  ;;  %820 = vmatprep.subr.mxu1 %v2045_v17  ;;  %v1022_v17 = vsub.f32 %v2257_v41, %v1021_v49  ;;  %v1011_v57 = vand.u32 4294901760, %v1010_v12  ;;  %v1040_v61 = vsub.f32 %v2283_v11, %v1039_v56 }
  0x6e   : > { %777 = vmatmul.mubr.f32.gmra.mxu0 %v2113_v43  ;;  %909 = vmatprep.subr.mxu0 %v2219_v24 }
  0x6f   : > { %822 = vmatpush1.msra.mxu1 %v2052_v19  ;;  %855 = vmatprep.mubr.f32.mxu1 %v1850_v0  ;;  %v1017_v19 = vand.u32 4294901760, %v1016_v52  ;;  %v1023_v60 = vand.u32 4294901760, %v1022_v17  ;;  %v1041_v16 = vand.u32 4294901760, %v1040_v61 }
  0x70   : > { %911 = vmatpush1.msra.mxu0 %v2231_v25  ;;  %857 = vmatmul.mubr.f32.vlgmr.msra.gmra.mxu1 %v2078_v29  ;;  %v963_v29 = vsub.f32 %v2278_v7, %v962_v13 }
  0x71   : > { %913 = vmatprep.subr.mxu0 %v2242_v37  ;;  %1000 = vmatprep.subr.mxu1 %v999_v51 }
  0x72   : > { %915 = vmatpush1.msra.mxu0 %v2252_v39  ;;  %948 = vmatprep.mubr.f32.mxu0 %v1850_v0  ;;  %v964_v1 = vand.u32 4294901760, %v963_v29 }
  0x73   : > { %1006 = vmatpush1.msra.mxu1 %v1005_v54  ;;  %954 = vmatmul.mubr.f32.vlgmr.msra.gmra.mxu0 %v953_v55 }
  0x74   : > { %1012 = vmatprep.subr.mxu1 %v1011_v57  ;;  %1116 = vmatprep.subr.mxu0 %v2209_v31 }
  0x75   : > { %862 = vmatprep.mubr.f32.mxu1 %v1850_v0  ;;  %1018 = vmatpush1.msra.mxu1 %v1017_v19 }
  0x76   : > { %1119 = vmatpush1.msra.mxu0 %v2215_v10  ;;  %864 = vmatmul.mubr.f32.gmra.mxu1 %v2113_v43 }
  0x77   : > { %1024 = vmatprep.subr.mxu1 %v1023_v60  ;;  %1122 = vmatprep.subr.mxu0 %v2234_v33 }
  0x78   : > { %959 = vmatprep.mubr.f32.mxu0 %v1850_v0  ;;  %1030 = vmatpush1.msra.mxu1 %v1029_v62 }
  0x79   : > { %1125 = vmatpush1.msra.mxu0 %v2240_v15  ;;  %1036 = vmatprep.subr.mxu1 %v1035_v63 }
  0x7a   : > { %965 = vmatmul.mubr.f32.gmra.mxu0 %v964_v1  ;;  %1128 = vmatprep.subr.mxu0 %v2257_v41 }
  0x7b   : > { %1042 = vmatpush1.msra.mxu1 %v1041_v16  ;;  %1075 = vmatprep.mubr.f32.mxu1 %v1850_v0 }
  0x7c   : > { %1131 = vmatpush1.msra.mxu0 %v2262_v42  ;;  %1077 = vmatmul.mubr.f32.vlgmr.msra.gmra.mxu1 %v2190_v27 }
  0x7d   : > { %1134 = vmatprep.subr.mxu0 %v2272_v46  ;;  %1212 = vmatprep.subr.mxu1 %v2176_v35 }
  0x7e   : > { %1137 = vmatpush1.msra.mxu0 %v2283_v11  ;;  %1170 = vmatprep.mubr.f32.mxu0 %v1850_v0 }
  0x7f   : > { %1214 = vmatpush1.msra.mxu1 %v2183_v18  ;;  %1173 = vmatmul.mubr.f32.vlgmr.msra.gmra.mxu0 %v2224_v32 }
  0x80   : > { %1216 = vmatprep.subr.mxu1 %v2194_v8  ;;  %1305 = vmatprep.subr.mxu0 %v997_v30 }
  0x81   : > { %1082 = vmatprep.mubr.f32.mxu1 %v1850_v0  ;;  %1218 = vmatpush1.msra.mxu1 %v2204_v9 }
  0x82   : > { %1309 = vmatpush1.msra.mxu0 %v1003_v5  ;;  %1084 = vmatmul.mubr.f32.gmra.mxu1 %v2248_v38 }
  0x83   : > { %1220 = vmatprep.subr.mxu1 %v2219_v24  ;;  %1313 = vmatprep.subr.mxu0 %v1009_v6 }
  0x84   : > { %1178 = vmatprep.mubr.f32.mxu0 %v1850_v0  ;;  %1222 = vmatpush1.msra.mxu1 %v2231_v25 }
  0x85   : > { %1317 = vmatpush1.msra.mxu0 %v1015_v45  ;;  %1224 = vmatprep.subr.mxu1 %v2242_v37 }
  0x86   : > { %1181 = vmatmul.mubr.f32.gmra.mxu0 %v2278_v7  ;;  %1321 = vmatprep.subr.mxu0 %v1021_v49 }
  0x87   : > { %1226 = vmatpush1.msra.mxu1 %v2252_v39  ;;  %1259 = vmatprep.mubr.f32.mxu1 %v1850_v0 }
  0x88   : > { %1325 = vmatpush1.msra.mxu0 %v1027_v50  ;;  %1263 = vmatmul.mubr.f32.vlgmr.msra.gmra.mxu1 %v951_v40 }
  0x89   : > { %1329 = vmatprep.subr.mxu0 %v1033_v53  ;;  %1406 = vmatprep.subr.mxu1 %v2176_v35 }
  0x8a   : > { %1333 = vmatpush1.msra.mxu0 %v1039_v56  ;;  %1366 = vmatprep.mubr.f32.mxu0 %v1850_v0 }
  0x8b   : > { %1408 = vmatpush1.msra.mxu1 %v2183_v18  ;;  %1368 = vmatmul.mubr.f32.vlgmr.msra.gmra.mxu0 %v2190_v27 }
  0x8c   : > { %1410 = vmatprep.subr.mxu1 %v2194_v8  ;;  %1268 = vmatprep.mubr.f32.mxu1 %v1850_v0 }
  0x8d   : > { %1412 = vmatpush1.msra.mxu1 %v2204_v9  ;;  %1373 = vmatprep.mubr.f32.mxu0 %v1850_v0 }
  0x8e   : > { %1272 = vmatmul.mubr.f32.gmra.mxu1 %v962_v13  ;;  %1414 = vmatprep.subr.mxu1 %v2219_v24 }
  0x8f   : > { %1416 = vmatpush1.msra.mxu1 %v2231_v25  ;;  %1375 = vmatmul.mubr.f32.gmra.mxu0 %v2248_v38 }
  0x90   : > { %1418 = vmatprep.subr.mxu1 %v2242_v37  ;;  %1453 = vmatprep.mubr.f32.mxu1 %v1850_v0 }
  0x91   : > { %1420 = vmatpush1.msra.mxu1 %v2252_v39 }
  0x92   : > { %1455 = vmatmul.mubr.f32.vlgmr.msra.gmra.mxu1 %v2190_v27 }
  0x93   : > { %1460 = vmatprep.mubr.f32.mxu1 %v1850_v0 }
  0x96   : > { %1462 = vmatmul.mubr.f32.gmra.mxu1 %v2248_v38 }
 0x112   : > { %v357_v43 = vpop.f32.mrf.mxu0 }
 0x114   : > { %v359_v21 = vpop.f32.mrf.mxu0 }
 0x116   : > { %v368_v22 = vpop.f32.mrf.mxu0 }
 0x118   : > { %v370_v26 = vpop.f32.mrf.mxu0  ;;  %v480_v2 = vpop.f32.mrf.mxu1 }
 0x119   : > { %v481_v25 = vadd.f32 %v480_v2, %v357_v43 }
 0x11a   : > { %v482_v34 = vpop.f32.mrf.mxu1 }
 0x11b   : > { %v576_v35 = vpop.f32.mrf.mxu0  ;;  %v483_v37 = vadd.f32 %v482_v34, %v359_v21 }
 0x11c   : > { %v577_v38 = vadd.f32 %v576_v35, %v481_v25 }
 0x11d   : > { %v578_v18 = vpop.f32.mrf.mxu0 }
 0x11e   : > { %v487_v3 = vpop.f32.mrf.mxu1  ;;  %v579_v40 = vadd.f32 %v578_v18, %v483_v37 }
 0x11f   : > { %v488_v39 = vadd.f32 %v487_v3, %v368_v22 }
 0x120   : > { %v489_v4 = vpop.f32.mrf.mxu1 }
 0x121   : > { %v490_v41 = vadd.f32 %v489_v4, %v370_v26 }
 0x122   : > { %v584_v8 = vpop.f32.mrf.mxu0 }
 0x123   : > { %v585_v45 = vadd.f32 %v584_v8, %v488_v39 }
 0x124   : > { %v586_v20 = vpop.f32.mrf.mxu0  ;;  %v666_v28 = vpop.f32.mrf.mxu1 }
 0x125   : > { %v667_v42 = vadd.f32 %v666_v28, %v577_v38  ;;  %v587_v11 = vadd.f32 %v586_v20, %v490_v41 }
 0x126   : > { %v668_v9 = vpop.f32.mrf.mxu1 }
 0x127   : > { %v771_v23 = vpop.f32.mrf.mxu0  ;;  %v669_v46 = vadd.f32 %v668_v9, %v579_v40 }
 0x128   : > { %v772_v47 = vadd.f32 %v771_v23, %v667_v42 }
 0x129   : > { %v773_v31 = vpop.f32.mrf.mxu0 }
 0x12a   : > { %v675_v27 = vpop.f32.mrf.mxu1  ;;  %v774_v12 = vadd.f32 %v773_v31, %v669_v46  ;;  %v1473_v31 = vpop.permute.xlu0 %1472 }
 0x12b   : > { %v676_v48 = vadd.f32 %v675_v27, %v585_v45 }
 0x12c   : > { %v677_v0 = vpop.f32.mrf.mxu1 }
 0x12d   : > { %v678_v50 = vadd.f32 %v677_v0, %v587_v11 }
 0x12e   : > { %v778_v10 = vpop.f32.mrf.mxu0  ;;  %v1478_v39 = vpop.permute.xlu0 %1477 }
 0x12f   : > { %v779_v13 = vadd.f32 %v778_v10, %v676_v48 }
 0x130   : > { %v780_v24 = vpop.f32.mrf.mxu0  ;;  %v858_v14 = vpop.f32.mrf.mxu1 }
 0x131   : > { %v859_v51 = vadd.f32 %v858_v14, %v772_v47  ;;  %v781_v17 = vadd.f32 %v780_v24, %v678_v50 }
 0x132   : > { %v860_v32 = vpop.f32.mrf.mxu1 }
 0x133   : > { %v955_v36 = vpop.f32.mrf.mxu0  ;;  %v861_v54 = vadd.f32 %v860_v32, %v774_v12 }
 0x134   : > { %v956_v56 = vadd.f32 %v955_v36, %v859_v51 }
 0x135   : > { %v957_v15 = vpop.f32.mrf.mxu0 }
 0x136   : > { %v865_v33 = vpop.f32.mrf.mxu1  ;;  %v958_v19 = vadd.f32 %v957_v15, %v861_v54 }
 0x137   : > { %v866_v57 = vadd.f32 %v865_v33, %v779_v13 }
 0x138   : > { %v867_v30 = vpop.f32.mrf.mxu1 }
 0x139   : > { %v868_v59 = vadd.f32 %v867_v30, %v781_v17 }
 0x13a   : > { %v966_v5 = vpop.f32.mrf.mxu0 }
 0x13b   : > { %v967_v62 = vadd.f32 %v966_v5, %v866_v57 }
 0x13c   : > { %v968_v6 = vpop.f32.mrf.mxu0  ;;  %v1078_v44 = vpop.f32.mrf.mxu1 }
 0x13d   : > { %v1079_v29 = vadd.f32 %v1078_v44, %v956_v56  ;;  %v969_v16 = vadd.f32 %v968_v6, %v868_v59 }
 0x13e   : > { %v1080_v7 = vpop.f32.mrf.mxu1 }
 0x13f   : > { %v1174_v49 = vpop.f32.mrf.mxu0  ;;  %v1081_v63 = vadd.f32 %v1080_v7, %v958_v19 }
 0x140   : > { %v1175_v43 = vadd.f32 %v1174_v49, %v1079_v29 }
 0x141   : > { %v1176_v53 = vpop.f32.mrf.mxu0 }
 0x142   : > { %v1085_v52 = vpop.f32.mrf.mxu1  ;;  %v1177_v26 = vadd.f32 %v1176_v53, %v1081_v63 }
 0x143   : > { %v1086_v21 = vadd.f32 %v1085_v52, %v967_v62 }
 0x144   : > { %v1087_v55 = vpop.f32.mrf.mxu1 }
 0x145   : > { %v1088_v2 = vadd.f32 %v1087_v55, %v969_v16 }
 0x146   : > { %v1182_v58 = vpop.f32.mrf.mxu0 }
 0x147   : > { %v1183_v18 = vadd.f32 %v1182_v58, %v1086_v21 }
 0x148   : > { %v1184_v60 = vpop.f32.mrf.mxu0  ;;  %v1264_v61 = vpop.f32.mrf.mxu1 }
 0x149   : > { %v1265_v34 = vadd.f32 %v1264_v61, %v1175_v43  ;;  %v1185_v28 = vadd.f32 %v1184_v60, %v1088_v2 }
 0x14a   : > { %v1266_v1 = vpop.f32.mrf.mxu1 }
 0x14b   : > { %v1369_v22 = vpop.f32.mrf.mxu0  ;;  %v1267_v4 = vadd.f32 %v1266_v1, %v1177_v26 }
 0x14c   : > { %v1370_v9 = vadd.f32 %v1369_v22, %v1265_v34 }
 0x14d   : > { %v1371_v35 = vpop.f32.mrf.mxu0 }
 0x14e   : > { %v1273_v3 = vpop.f32.mrf.mxu1  ;;  %v1372_v0 = vadd.f32 %v1371_v35, %v1267_v4 }
 0x14f   : > { %v1376_v20 = vpop.f32.mrf.mxu0  ;;  %v1274_v23 = vadd.f32 %v1273_v3, %v1183_v18 }
 0x150   : > { %v1275_v8 = vpop.f32.mrf.mxu1 }
 0x151   : > { %v1276_v10 = vadd.f32 %v1275_v8, %v1185_v28  ;;  %v1378_v14 = vpop.f32.mrf.mxu0  ;;  %v1377_v36 = vadd.f32 %v1376_v20, %v1274_v23 }
 0x152   : > { %v1456_v27 = vpop.f32.mrf.mxu1 }
 0x153   : > { %v1457_v24 = vadd.f32 %v1456_v27, %v1370_v9  ;;  %v1379_v37 = vadd.f32 %v1378_v14, %v1276_v10 }
 0x154   : > { %v1458_v32 = vpop.f32.mrf.mxu1 }
 0x155   : > { %v1480_v25 = vadd.f32 %v1473_v31, %v1457_v24  ;;  %v1459_v33 = vadd.f32 %v1458_v32, %v1372_v0 }
 0x156   : > { %v1463_v15 = vpop.f32.mrf.mxu1 }
 0x157   : > { %1484 = vst [vmem:[%s248_s11] sm:$0xff] %v1480_v25  ;;  %v1481_v30 = vadd.f32 %v1473_v31, %v1459_v33  ;;  %v1464_v38 = vadd.f32 %v1463_v15, %v1377_v36 }
 0x158   : > { %v1465_v5 = vpop.f32.mrf.mxu1 }
 0x159   : > { %1485 = vst [vmem:[%s248_s11 + $0x8] sm:$0xff] %v1481_v30  ;;  %v1482_v40 = vadd.f32 %v1478_v39, %v1464_v38  ;;  %v1466_v41 = vadd.f32 %v1465_v5, %v1379_v37 }
 0x15b   : > { %1486 = vst [vmem:[%s248_s11 + $0x10] sm:$0xff] %v1482_v40  ;;  %v1483_v42 = vadd.f32 %v1478_v39, %v1466_v41 }
 0x15d   : > { %1487 = vst [vmem:[%s248_s11 + $0x18] sm:$0xff] %v1483_v42 }
 0x15e   : > { %1771 = shalt.err (!%p1768_p5)
}
 0x15f   : > { %s1772_s7 = scalar_lea.hbm %s2402_s30, 512  ;;  %s1776_s24 = scalar_lea.hbm %s2454_s4, 1024 }
 0x160   : > { %p1773_p7 = scmp.ne.s32.totalorder %s2402_s30, %s1772_s7  ;;  %p1777_p9 = scmp.lt.s32.totalorder %s2402_s30, %s2454_s4 }
 0x161   : > { %p1778_p11 = scmp.lt.s32.totalorder %s1776_s24, %s1772_s7 }
 0x162   : > { %p1774_p6 = pnand %p1773_p7, %p1967_p13 }
 0x163   : > { %p1779_p10 = por %p1778_p11, %p1777_p9 }
 0x164   : > { %p1775_p4 = pneg %p1774_p6 }
 0x166   : > { %p1780_p1 = pnand %p1779_p10, %p1775_p4 }
 0x168   : > { %1783 = shalt.err (!%p1780_p1)
}
 0x169   : > { %s1853_s11 = smov 256   ;;  %s1854_s12 = smov 16  }
 0x16a   : > { %1628 = dma.vmem_to_hbm [thread:$0]  (%p1967_p13), %s2397_s29, 512, %s2402_s30, %s1489_s6, %s1853_s11, %s1853_s11, %s1854_s12  }
 0x16b PF: > { %s1519_s22 = sand.u32 1, %s1822_s15   ;;  %p2468_p8 = scmp.ne.s32.totalorder %s2460_s26, 0 }
 0x16c   : > { %p2469_p12 = scmp.ge.s32.totalorder %s1842_s20, 2  ;;  %s1520_s21 = scalar_lea.sflag [#allocation4], %s1519_s22 }
 0x16e   : > { %p1639_p0 = pnand %p2469_p12, %p2468_p8 }
 0x170   : > { %p1640_p2 = pneg %p1639_p0 }
 0x172   : > { %1817 = dma.done.wait (%p1640_p2), %s1520_s21, 512  }
 0x173   : > { %1819 = vsyncadd (%p1640_p2), %s1520_s21, 4294966784  ;;  %s21_s20 = sadd.s32 1, %s1842_s20   ;;  %s2470_s15 = smov %s1826_s16 }
 0x174   : > { %p18_p3 = scmp.ge.s32.totalorder %s21_s20, 4   ;;  %s2471_s16 = smov %s1830_s17 }
 0x175   : > { %s2472_s17 = smov %s1976_s28  ;;  %s2473_s18 = smov %s1838_s19 }
 0x176   : > { %s2474_s19 = smov %s2476_s5  ;;  %20 = sbr.rel (!%p18_p3) target bundleno = 9 (0x9), region = 86 }
 0x17b   :  { %1525 = vsyncpa [#allocation3], 1 }
 0x17c   :  { %1527 = vsyncpa [#allocation3 + $0x1], 1 }
 0x17d   :  { %1528 = vsyncpa [#allocation6], 1 }
 0x17e   :  { %1530 = vsyncpa [#allocation6 + $0x1], 1 }
 0x17f   :  { %1531 = vsyncpa [#allocation4], 1 }
 0x180   :  { %1533 = vsyncpa [#allocation4 + $0x1], 1 }

</bundles_post_ra>
